<compile_context>
chip_gen: v6e
topology: v6e:2x2x1
jax: 0.10.0
libtpu: 0.0.40
codegen_flags: <defaults>
</compile_context>

<pallas_src>
import functools
import math

import jax
import jax.numpy as jnp
from jax import lax
from jax.experimental import pallas as pl
from jax.experimental.pallas import tpu as pltpu

EPS = 1e-5
_TM_CAP = 65536                # max lanes per tile (review: 32768-65536)
_STEP_TARGET_BYTES = 2 << 20   # aim for ~2 MiB of real HBM traffic per step
_N_F32_TEMPS = 6               # rough count of live (C, tm) f32 temporaries


def _sublane_mult(dtype):
    return {4: 8, 2: 16, 1: 32}.get(jnp.dtype(dtype).itemsize, 8)


def _round_up(v, m):
    return -(-v // m) * m


def _vmem_caps():
    try:
        cap = int(pltpu.get_tpu_info().vmem_capacity_bytes)
    except Exception:
        cap = 64 << 20          # conservative default (v7x physical VMEM)
    budget = min(32 << 20, cap // 2)   # allowed per-step working set
    return cap, budget


def _choose_blocks(N, C, HW, x_dtype, t_dtype, labels_mode, tm=None, bn=None):
    """Pick (bn, tm, vmem_limit) with sublane-padding-aware VMEM accounting."""
    cap, budget = _vmem_caps()
    x_rows = _round_up(C, _sublane_mult(x_dtype))
    t_rows = _round_up(1 if labels_mode else C, _sublane_mult(t_dtype))
    x_bpl = x_rows * jnp.dtype(x_dtype).itemsize            # padded B/lane/row
    t_bpl = t_rows * jnp.dtype(t_dtype).itemsize
    # double-buffered input tiles + f32 temporaries inside the kernel body
    padded_per_lane = 2 * (x_bpl + t_bpl) + _N_F32_TEMPS * _round_up(C, 8) * 4
    real_per_lane = (C * jnp.dtype(x_dtype).itemsize
                     + (1 if labels_mode else C) * jnp.dtype(t_dtype).itemsize)

    if tm is None:
        tm = min(_TM_CAP, budget // padded_per_lane)
        tm = max(128, (tm // 128) * 128)
        if HW <= tm:
            tm = HW
    assert tm == HW or tm % 128 == 0, "tile must be lane-aligned or full-extent"

    if bn is None:
        bn = 1
        if tm == HW and N > 1:
            # Whole spatial extent fits in one tile: also block batch rows so
            # each grid step moves enough bytes to amortize the ~0.35 us step
            # overhead, but keep >= 2 batch groups for megacore / pairwise
            # partial sums.
            for cand in range(2, N + 1):
                if N % cand:
                    continue
                if (N // cand) < 2:
                    break
                if cand * HW * padded_per_lane > budget:
                    break
                bn = cand
                if cand * HW * real_per_lane >= _STEP_TARGET_BYTES:
                    break
    assert N % bn == 0, "batch block must divide N"

    footprint = bn * tm * padded_per_lane
    vmem_limit = int(min(cap, max(32 << 20, footprint + (16 << 20))))
    return bn, tm, vmem_limit


def _gdl_kernel(x_ref, t_ref, sx_ref, st_ref, sxt_ref, *,
                hw, tm, c, bn, num_tiles, need_mask, labels_mode):
    """Grid = (batch_groups ['parallel'], spatial_tiles ['arbitrary']).

    Outputs are per-batch-group (1, C, 1) partial sums of sigmoid(x), t and
    sigmoid(x)*t, accumulated in VMEM across the spatial-tile axis.
    """
    i = pl.program_id(1)

    @pl.when(i == 0)
    def _init():
        sx_ref[...] = jnp.zeros(sx_ref.shape, sx_ref.dtype)
        st_ref[...] = jnp.zeros(st_ref.shape, st_ref.dtype)
        sxt_ref[...] = jnp.zeros(sxt_ref.shape, sxt_ref.dtype)

    def _accumulate(apply_mask):
        x = jax.nn.sigmoid(x_ref[...].astype(jnp.float32))       # (bn, C, tm)
        if labels_mode:
            cls = lax.broadcasted_iota(jnp.int32, (bn, c, tm), 1)
            t_bool = t_ref[...] == cls                            # (bn,1,tm)==(bn,C,tm)
            t = None
        else:
            t = t_ref[...].astype(jnp.float32)                    # (bn, C, tm)
            t_bool = None

        if apply_mask:
            # Ragged final spatial tile: zero out-of-range lanes.
            lane = lax.broadcasted_iota(jnp.int32, (bn, c, tm), 2)
            valid = (i * tm + lane) < hw
            x = jnp.where(valid, x, 0.0)
            if labels_mode:
                t_bool = jnp.logical_and(t_bool, valid)
            else:
                t = jnp.where(valid, t, 0.0)

        if labels_mode:
            xt = jnp.where(t_bool, x, 0.0)
            t = t_bool.astype(jnp.float32)
        else:
            xt = x * t

        # Fold batch rows (VPU adds) then lanes (XLU) into (C, 1) running sums.
        if bn == 1:
            xs, ts, xts = x[0], t[0], xt[0]
        else:
            xs = jnp.sum(x, axis=0)
            ts = jnp.sum(t, axis=0)
            xts = jnp.sum(xt, axis=0)
        sx_ref[0] += jnp.sum(xs, axis=-1, keepdims=True)
        st_ref[0] += jnp.sum(ts, axis=-1, keepdims=True)
        sxt_ref[0] += jnp.sum(xts, axis=-1, keepdims=True)

    if need_mask:
        last = num_tiles - 1

        @pl.when(i != last)
        def _hot():
            _accumulate(False)

        @pl.when(i == last)
        def _tail():
            _accumulate(True)
    else:
        _accumulate(False)


def _gdl_partial_sums(x3, t3, labels_mode, tm=None, bn=None):
    """x3: (N, C, HW); t3: (N, C, HW) dense target or (N, 1, HW) int32 labels."""
    N, C, HW = x3.shape
    bn, tm, vmem_limit = _choose_blocks(N, C, HW, x3.dtype, t3.dtype,
                                        labels_mode, tm=tm, bn=bn)
    ng = N // bn
    num_tiles = -(-HW // tm)
    need_mask = (HW % tm) != 0

    kernel = functools.partial(
        _gdl_kernel, hw=HW, tm=tm, c=C, bn=bn, num_tiles=num_tiles,
        need_mask=need_mask, labels_mode=labels_mode)

    t_block = (bn, 1, tm) if labels_mode else (bn, C, tm)
    out_block = pl.BlockSpec((1, C, 1), lambda n, i: (n, 0, 0))

    sx, st, sxt = pl.pallas_call(
        kernel,
        out_shape=tuple(jax.ShapeDtypeStruct((ng, C, 1), jnp.float32)
                        for _ in range(3)),
        grid_spec=pltpu.PrefetchScalarGridSpec(
            num_scalar_prefetch=0,
            grid=(ng, num_tiles),
            in_specs=[
                pl.BlockSpec((bn, C, tm), lambda n, i: (n, 0, i)),
                pl.BlockSpec(t_block, lambda n, i: (n, 0, i)),
            ],
            out_specs=(out_block, out_block, out_block),
        ),
        compiler_params=pltpu.CompilerParams(
            dimension_semantics=("parallel", "arbitrary"),
            vmem_limit_bytes=vmem_limit,
        ),
    )(x3, t3)

    # Per-batch-group partials -> per-class totals (tiny; plain JAX).  On v7x
    # this also merges the two TensorCores' halves of the 'parallel' axis.
    return (sx.sum(axis=0)[:, 0], st.sum(axis=0)[:, 0], sxt.sum(axis=0)[:, 0])


def _combine(sum_p, sum_t, sum_pt, eps=EPS):
    class_w = 1.0 / jnp.maximum(sum_t * sum_t, eps)      # clamp(min=eps)
    intersect = jnp.sum(sum_pt * class_w)
    denom = jnp.sum((sum_p + sum_t) * class_w)
    return 1.0 - 2.0 * intersect / jnp.maximum(denom, eps)


@functools.partial(jax.jit, static_argnames=("tm", "bn"))
def generalized_dice_loss(inp, target, tm=None, bn=None):
    """Module-faithful path: input/target of identical shape (N, C, *spatial)."""
    assert inp.shape == target.shape, "'input' and 'target' must have the same shape"
    N, C = inp.shape[0], inp.shape[1]
    HW = math.prod(inp.shape[2:])
    x3 = inp.reshape(N, C, HW)            # free contiguous reshape, no transpose
    t3 = target.reshape(N, C, HW)
    return _combine(*_gdl_partial_sums(x3, t3, labels_mode=False, tm=tm, bn=bn))


@functools.partial(jax.jit, static_argnames=("tm", "bn"))
def generalized_dice_loss_from_labels(inp, labels, tm=None, bn=None):
    """Fast path: integer class labels (N, *spatial); the one-hot target is
    built in-kernel (equivalent to target = one_hot(labels, C))."""
    N, C = inp.shape[0], inp.shape[1]
    HW = math.prod(inp.shape[2:])
    assert labels.shape[0] == N and math.prod(labels.shape[1:]) == HW
    x3 = inp.reshape(N, C, HW)
    l3 = labels.reshape(N, 1, HW).astype(jnp.int32)
    return _combine(*_gdl_partial_sums(x3, l3, labels_mode=True, tm=tm, bn=bn))


def _reference_gdl(inp, target):
    """Pure-JAX reference mirroring the PyTorch forward (sigmoid, no ignore_index, no weight)."""
    C = inp.shape[1]
    perm = (1, 0) + tuple(range(2, inp.ndim))
    p = jnp.transpose(jax.nn.sigmoid(inp.astype(jnp.float32)), perm).reshape(C, -1)
    t = jnp.transpose(target.astype(jnp.float32), perm).reshape(C, -1)
    t_sum = t.sum(-1)
    w = 1.0 / jnp.maximum(t_sum * t_sum, EPS)
    intersect = ((p * t).sum(-1) * w).sum()
    denom = ((p + t).sum(-1) * w).sum()
    return 1.0 - 2.0 * intersect / jnp.maximum(denom, EPS)


if __name__ == "__main__":
    # TODO(synk): ignore_index masking, the optional per-class `weight` buffer
    # and the softmax-normalization branch are not implemented (module
    # defaults: ignore_index=None, weight=None, sigmoid_normalization=True).
    key = jax.random.PRNGKey(0)

    # Test 1: small NCHW, bf16 one-hot target; dense path and labels fast path.
    k1, k2 = jax.random.split(key)
    N, C, H, W = 2, 4, 16, 16
    x = jax.random.normal(k1, (N, C, H, W), dtype=jnp.float32)
    labels = jax.random.randint(k2, (N, H, W), 0, C)
    target = jax.nn.one_hot(labels, C, axis=1, dtype=jnp.bfloat16)

    ref = _reference_gdl(x, target)
    loss = jax.block_until_ready(generalized_dice_loss(x, target))
    assert jnp.allclose(loss, ref, rtol=1e-5, atol=1e-5), (loss, ref)
    loss_l = jax.block_until_ready(generalized_dice_loss_from_labels(x, labels))
    assert jnp.allclose(loss_l, ref, rtol=1e-5, atol=1e-5), (loss_l, ref)

    # Test 2: ragged spatial extent vs. a forced small tile (exercises the
    # pl.when-gated last-tile mask on both paths).
    k3, k4 = jax.random.split(k1)
    N2, C2, H2, W2 = 2, 4, 16, 20           # HW = 320, tm = 128 -> ragged tail
    x2 = jax.random.normal(k3, (N2, C2, H2, W2), dtype=jnp.float32)
    labels2 = jax.random.randint(k4, (N2, H2, W2), 0, C2)
    target2 = jax.nn.one_hot(labels2, C2, axis=1, dtype=jnp.bfloat16)

    ref2 = _reference_gdl(x2, target2)
    loss2 = jax.block_until_ready(generalized_dice_loss(x2, target2, tm=128))
    assert jnp.allclose(loss2, ref2, rtol=1e-5, atol=1e-5), (loss2, ref2)
    loss2_l = jax.block_until_ready(
        generalized_dice_loss_from_labels(x2, labels2, tm=128))
    assert jnp.allclose(loss2_l, ref2, rtol=1e-5, atol=1e-5), (loss2_l, ref2)

    # Test 3: batch-row blocking (Bn=2) with full-extent spatial tiles.
    k5, k6 = jax.random.split(k3)
    N3, C3, H3, W3 = 4, 4, 8, 8
    x3 = jax.random.normal(k5, (N3, C3, H3, W3), dtype=jnp.float32)
    labels3 = jax.random.randint(k6, (N3, H3, W3), 0, C3)
    target3 = jax.nn.one_hot(labels3, C3, axis=1, dtype=jnp.bfloat16)

    ref3 = _reference_gdl(x3, target3)
    loss3 = jax.block_until_ready(generalized_dice_loss(x3, target3, bn=2))
    assert jnp.allclose(loss3, ref3, rtol=1e-5, atol=1e-5), (loss3, ref3)
    loss3_l = jax.block_until_ready(
        generalized_dice_loss_from_labels(x3, labels3, bn=2))
    assert jnp.allclose(loss3_l, ref3, rtol=1e-5, atol=1e-5), (loss3_l, ref3)

    print("KERNEL_OK")
</pallas_src>

<mosaic_0001>
module attributes {stable_mosaic.version = 11 : i64} {
  func.func @_gdl_kernel(%arg0: i32, %arg1: i32, %arg2: memref<1x4x256xf32, #tpu.memory_space<vmem>>, %arg3: memref<1x4x256xbf16, #tpu.memory_space<vmem>>, %arg4: memref<1x4x1xf32, #tpu.memory_space<vmem>>, %arg5: memref<1x4x1xf32, #tpu.memory_space<vmem>>, %arg6: memref<1x4x1xf32, #tpu.memory_space<vmem>>) attributes {dimension_semantics = [#tpu.dimension_semantics<parallel>, #tpu.dimension_semantics<arbitrary>], iteration_bounds = array<i64: 2, 1>, scalar_prefetch = 0 : i64, scratch_operands = 0 : i64, tpu.core_type = #tpu.core_type<tc>, window_params = [{transform_indices = @transform_0, window_bounds = array<i64: 1, 4, 256>}, {transform_indices = @transform_1, window_bounds = array<i64: 1, 4, 256>}, {transform_indices = @transform_2, window_bounds = array<i64: 1, 4, 1>}, {transform_indices = @transform_3, window_bounds = array<i64: 1, 4, 1>}, {transform_indices = @transform_4, window_bounds = array<i64: 1, 4, 1>}]} {
    %c0_i32 = arith.constant 0 : i32
    %0 = arith.cmpi eq, %arg1, %c0_i32 : i32
    %1 = arith.extui %0 : i1 to i32
    %c0_i32_0 = arith.constant 0 : i32
    %2 = arith.cmpi ne, %1, %c0_i32_0 : i32
    scf.if %2 {
      %cst_27 = arith.constant 0.000000e+00 : f32
      %39 = vector.broadcast %cst_27 : f32 to vector<1x4x1xf32>
      %c0_28 = arith.constant 0 : index
      %c0_29 = arith.constant 0 : index
      %c0_30 = arith.constant 0 : index
      %40 = vector.load %arg4[%c0_28, %c0_29, %c0_30] : memref<1x4x1xf32, #tpu.memory_space<vmem>>, vector<1x4x1xf32>
      tpu.vector_store %arg4[%c0_28, %c0_29, %c0_30], %39 {strides = array<i32>} : memref<1x4x1xf32, #tpu.memory_space<vmem>>, vector<1x4x1xf32>,
      %cst_31 = arith.constant 0.000000e+00 : f32
      %41 = vector.broadcast %cst_31 : f32 to vector<1x4x1xf32>
      %c0_32 = arith.constant 0 : index
      %c0_33 = arith.constant 0 : index
      %c0_34 = arith.constant 0 : index
      %42 = vector.load %arg5[%c0_32, %c0_33, %c0_34] : memref<1x4x1xf32, #tpu.memory_space<vmem>>, vector<1x4x1xf32>
      tpu.vector_store %arg5[%c0_32, %c0_33, %c0_34], %41 {strides = array<i32>} : memref<1x4x1xf32, #tpu.memory_space<vmem>>, vector<1x4x1xf32>,
      %cst_35 = arith.constant 0.000000e+00 : f32
      %43 = vector.broadcast %cst_35 : f32 to vector<1x4x1xf32>
      %c0_36 = arith.constant 0 : index
      %c0_37 = arith.constant 0 : index
      %c0_38 = arith.constant 0 : index
      %44 = vector.load %arg6[%c0_36, %c0_37, %c0_38] : memref<1x4x1xf32, #tpu.memory_space<vmem>>, vector<1x4x1xf32>
      tpu.vector_store %arg6[%c0_36, %c0_37, %c0_38], %43 {strides = array<i32>} : memref<1x4x1xf32, #tpu.memory_space<vmem>>, vector<1x4x1xf32>,
    } else {
    }
    %c0 = arith.constant 0 : index
    %c0_1 = arith.constant 0 : index
    %c0_2 = arith.constant 0 : index
    %3 = vector.load %arg2[%c0, %c0_1, %c0_2] : memref<1x4x256xf32, #tpu.memory_space<vmem>>, vector<1x4x256xf32>
    %4 = arith.negf %3 : vector<1x4x256xf32>
    %5 = math.exp %4 : vector<1x4x256xf32>
    %cst = arith.constant 1.000000e+00 : f32
    %6 = vector.broadcast %cst : f32 to vector<1x4x256xf32>
    %7 = arith.addf %6, %5 : vector<1x4x256xf32>
    %8 = arith.divf %6, %7 : vector<1x4x256xf32>
    %c0_3 = arith.constant 0 : index
    %c0_4 = arith.constant 0 : index
    %c0_5 = arith.constant 0 : index
    %9 = vector.load %arg3[%c0_3, %c0_4, %c0_5] : memref<1x4x256xbf16, #tpu.memory_space<vmem>>, vector<1x4x256xbf16>
    %10 = arith.extf %9 : vector<1x4x256xbf16> to vector<1x4x256xf32>
    %11 = arith.mulf %8, %10 : vector<1x4x256xf32>
    %12 = vector.shape_cast %8 : vector<1x4x256xf32> to vector<4x256xf32>
    %13 = vector.shape_cast %10 : vector<1x4x256xf32> to vector<4x256xf32>
    %14 = vector.shape_cast %11 : vector<1x4x256xf32> to vector<4x256xf32>
    %c0_6 = arith.constant 0 : index
    %c0_7 = arith.constant 0 : index
    %c0_8 = arith.constant 0 : index
    %15 = vector.load %arg4[%c0_6, %c0_7, %c0_8] : memref<1x4x1xf32, #tpu.memory_space<vmem>>, vector<1x4x1xf32>
    %16 = vector.shape_cast %15 : vector<1x4x1xf32> to vector<4x1xf32>
    %cst_9 = arith.constant dense<0.000000e+00> : vector<4xf32>
    %17 = vector.multi_reduction <add>, %12, %cst_9 [1] : vector<4x256xf32> to vector<4xf32>
    %18 = vector.shape_cast %17 : vector<4xf32> to vector<4x1xf32>
    %19 = arith.addf %16, %18 : vector<4x1xf32>
    %c0_10 = arith.constant 0 : index
    %c0_11 = arith.constant 0 : index
    %c0_12 = arith.constant 0 : index
    %20 = vector.load %arg4[%c0_10, %c0_11, %c0_12] : memref<1x4x1xf32, #tpu.memory_space<vmem>>, vector<1x4x1xf32>
    %21 = vector.shape_cast %20 : vector<1x4x1xf32> to vector<4x1xf32>
    %22 = vector.shape_cast %19 : vector<4x1xf32> to vector<1x4x1xf32>
    tpu.vector_store %arg4[%c0_10, %c0_11, %c0_12], %22 {strides = array<i32>} : memref<1x4x1xf32, #tpu.memory_space<vmem>>, vector<1x4x1xf32>,
    %c0_13 = arith.constant 0 : index
    %c0_14 = arith.constant 0 : index
    %c0_15 = arith.constant 0 : index
    %23 = vector.load %arg5[%c0_13, %c0_14, %c0_15] : memref<1x4x1xf32, #tpu.memory_space<vmem>>, vector<1x4x1xf32>
    %24 = vector.shape_cast %23 : vector<1x4x1xf32> to vector<4x1xf32>
    %cst_16 = arith.constant dense<0.000000e+00> : vector<4xf32>
    %25 = vector.multi_reduction <add>, %13, %cst_16 [1] : vector<4x256xf32> to vector<4xf32>
    %26 = vector.shape_cast %25 : vector<4xf32> to vector<4x1xf32>
    %27 = arith.addf %24, %26 : vector<4x1xf32>
    %c0_17 = arith.constant 0 : index
    %c0_18 = arith.constant 0 : index
    %c0_19 = arith.constant 0 : index
    %28 = vector.load %arg5[%c0_17, %c0_18, %c0_19] : memref<1x4x1xf32, #tpu.memory_space<vmem>>, vector<1x4x1xf32>
    %29 = vector.shape_cast %28 : vector<1x4x1xf32> to vector<4x1xf32>
    %30 = vector.shape_cast %27 : vector<4x1xf32> to vector<1x4x1xf32>
    tpu.vector_store %arg5[%c0_17, %c0_18, %c0_19], %30 {strides = array<i32>} : memref<1x4x1xf32, #tpu.memory_space<vmem>>, vector<1x4x1xf32>,
    %c0_20 = arith.constant 0 : index
    %c0_21 = arith.constant 0 : index
    %c0_22 = arith.constant 0 : index
    %31 = vector.load %arg6[%c0_20, %c0_21, %c0_22] : memref<1x4x1xf32, #tpu.memory_space<vmem>>, vector<1x4x1xf32>
    %32 = vector.shape_cast %31 : vector<1x4x1xf32> to vector<4x1xf32>
    %cst_23 = arith.constant dense<0.000000e+00> : vector<4xf32>
    %33 = vector.multi_reduction <add>, %14, %cst_23 [1] : vector<4x256xf32> to vector<4xf32>
    %34 = vector.shape_cast %33 : vector<4xf32> to vector<4x1xf32>
    %35 = arith.addf %32, %34 : vector<4x1xf32>
    %c0_24 = arith.constant 0 : index
    %c0_25 = arith.constant 0 : index
    %c0_26 = arith.constant 0 : index
    %36 = vector.load %arg6[%c0_24, %c0_25, %c0_26] : memref<1x4x1xf32, #tpu.memory_space<vmem>>, vector<1x4x1xf32>
    %37 = vector.shape_cast %36 : vector<1x4x1xf32> to vector<4x1xf32>
    %38 = vector.shape_cast %35 : vector<4x1xf32> to vector<1x4x1xf32>
    tpu.vector_store %arg6[%c0_24, %c0_25, %c0_26], %38 {strides = array<i32>} : memref<1x4x1xf32, #tpu.memory_space<vmem>>, vector<1x4x1xf32>,
    return
  }
  func.func @transform_0(%arg0: i32, %arg1: i32) -> (i32, i32, i32) {
    %c0_i32 = arith.constant 0 : i32
    %c0_i32_0 = arith.constant 0 : i32
    return %arg0, %c0_i32, %arg1 : i32, i32, i32
  }
  func.func @transform_1(%arg0: i32, %arg1: i32) -> (i32, i32, i32) {
    %c0_i32 = arith.constant 0 : i32
    %c0_i32_0 = arith.constant 0 : i32
    return %arg0, %c0_i32, %arg1 : i32, i32, i32
  }
  func.func @transform_2(%arg0: i32, %arg1: i32) -> (i32, i32, i32) {
    %c0_i32 = arith.constant 0 : i32
    %c0_i32_0 = arith.constant 0 : i32
    %c0_i32_1 = arith.constant 0 : i32
    return %arg0, %c0_i32, %c0_i32_0 : i32, i32, i32
  }
  func.func @transform_3(%arg0: i32, %arg1: i32) -> (i32, i32, i32) {
    %c0_i32 = arith.constant 0 : i32
    %c0_i32_0 = arith.constant 0 : i32
    %c0_i32_1 = arith.constant 0 : i32
    return %arg0, %c0_i32, %c0_i32_0 : i32, i32, i32
  }
  func.func @transform_4(%arg0: i32, %arg1: i32) -> (i32, i32, i32) {
    %c0_i32 = arith.constant 0 : i32
    %c0_i32_0 = arith.constant 0 : i32
    %c0_i32_1 = arith.constant 0 : i32
    return %arg0, %c0_i32, %c0_i32_0 : i32, i32, i32
  }
}

</mosaic_0001>

<bundles_post_ra>
// kernel: generalized_dice_loss.1
= control target key start
LH: loop header
LB: loop body
LE: loop exit
PB: predicated region body
PF: predicated region fallthrough
CT: control target
= control target key end

     0   :  { %s577_s15 = smov 0   ;;  %s579_s16 = smov 0   ;;  %s636_s0 = inlined_call_operand.vmem [shape: f32[2,4,256], index: 0, kind: input, shape index: {}]   ;;  %s637_s1 = inlined_call_operand.vmem [shape: bf16[2,4,256], index: 1, kind: input, shape index: {}]   ;;  %s638_s2 = inlined_call_operand.vmem [shape: f32[2,4,1], index: 2, kind: output, shape index: {0}]   ;;  %s639_s3 = inlined_call_operand.vmem [shape: f32[2,4,1], index: 3, kind: output, shape index: {1}]   ;;  %s640_s4 = inlined_call_operand.vmem [shape: f32[2,4,1], index: 4, kind: output, shape index: {2}]  }
   0x1   :  { %s581_s17 = smov 0  }
   0x2 LB: > { %s27_s18 = sadd.s32 1, %s545_s16  ;;  %p485_p0 = scmp.ge.s32.totalorder %s549_s17, 1  ;;  %s549_s17 = sphi %s581_s17, %s15_s17   ;;  %s545_s16 = sphi %s579_s16, %s642_s16   ;;  %s541_s15 = sphi %s577_s15, %s641_s15  }
   0x3   : > { %p29_p1 = scmp.ge.s32.totalorder %s27_s18, 2  ;;  %p203_p2 = scmp.lt.s32.totalorder %s549_s17, 3 }
   0x5   : > { %s644_s18 = smov (%p29_p1, %s27_s18), 0  ;;  %p204_p3 = pnand %p485_p0, %p203_p2 }
   0x6   : > { %p250_p4 = scmp.lt.s32.totalorder (!%p204_p3), %s541_s15, 1 }
   0x7   : > { %207 = sbr.rel (%p204_p3) target bundleno = 198 (0xc6), region = 28 }
   0xc   : > { %s646_s15 = smov (!%p250_p4, %s541_s15), 1  ;;  %vm285_vm0 = vcmask 3072   ;;  %v551_v2 = vmov 0.0   ;;  %vm303_vm1 = vcmask 1043456  }
   0xd   : > { %s496_s19 = sshll.u32 %s646_s15, 3  ;;  %s598_s23 = sshll.u32 %s646_s15, 2 }
   0xe   : > { %s257_s22 = scalar_lea.vmem %s636_s0, %s496_s19  ;;  %s604_s26 = scalar_lea.vmem %s638_s2, %s598_s23 }
   0xf   : > { %v289_v0 = vld [vmem:[%s257_s22] sm:$0xff]  ;;  %286 = vst.msk [vmem:[%s604_s26] sm:$0xf] %vm285_vm0, %v551_v2  ;;  %s267_s29 = scalar_lea.vmem %s637_s1, %s598_s23  ;;  %s276_s6 = scalar_lea.vmem %s639_s3, %s598_s23 }
  0x10   : > { %v493_v1 = vmul.f32 -1.442695, %v289_v0  ;;  %v296_v5 = vld [vmem:[%s267_s29] sm:$0xf]  ;;  %s280_s9 = scalar_lea.vmem %s640_s4, %s598_s23  ;;  %287 = vst.msk [vmem:[%s276_s6] sm:$0xf] %vm285_vm0, %v551_v2 }
  0x11   : > { %v297_v6 = vunpack.c.l.bf16 %v296_v5  ;;  %288 = vst.msk [vmem:[%s280_s9] sm:$0xf] %vm285_vm0, %v551_v2 }
  0x12   : > { %523 = vpow2.f32 %v493_v1 }
  0x13   : > { %v314_v7 = vcombine.high %v297_v6, %v297_v6  ;;  %v316_v12 = vsel %vm303_vm1, %v297_v6, 0.0 }
  0x15   : > { %v317_v14 = vsel %vm303_vm1, %v314_v7, 0.0 }
  0x16   : > { %v318_v19 = vadd.f32 %v317_v14, %v316_v12  ;;  %v299_v21 = vld [vmem:[%s604_s26] sm:$0xf] }
  0x17   : > { %v312_v25 = vld [vmem:[%s276_s6] sm:$0xf] }
  0x18   : > { %v323_v23 = vld [vmem:[%s280_s9] sm:$0xf] }
  0x1f   : > { %v524_v3 = vpop.eup %523 }
  0x20   : > { %v293_v4 = vadd.f32 1.0, %v524_v3 }
  0x22   : > { %525 = vrcp.f32 %v293_v4 }
  0x2f   : > { %v526_v8 = vpop.eup %525 }
  0x30   : > { %v301_v9 = vcombine.high %v526_v8, %v526_v8  ;;  %v304_v10 = vsel %vm303_vm1, %v526_v8, 0.0  ;;  %v298_v11 = vmul.f32 %v526_v8, %v297_v6 }
  0x32   : > { %v305_v13 = vsel %vm303_vm1, %v301_v9, 0.0  ;;  %v325_v15 = vcombine.high %v298_v11, %v298_v11  ;;  %v327_v16 = vsel %vm303_vm1, %v298_v11, 0.0 }
  0x33   : > { %v306_v17 = vadd.f32 %v305_v13, %v304_v10 }
  0x34   : > { %v328_v18 = vsel %vm303_vm1, %v325_v15, 0.0 }
  0x35   : > { %307 = vadd.xlane.f32.xlu0 %v306_v17  ;;  %v329_v20 = vadd.f32 %v328_v18, %v327_v16 }
  0x37   : > { %330 = vadd.xlane.f32.xlu1 %v329_v20 }
  0x39   : > { %319 = vadd.xlane.f32.xlu0 %v318_v19 }
  0xbe   : > { %v308_v22 = vpop.xlane.xlu0 %307 }
  0xbf   : > { %v309_v24 = vadd.f32 %v308_v22, %v299_v21 }
  0xc0   : > { %v331_v26 = vpop.xlane.xlu1 %330 }
  0xc1   : > { %311 = vst.msk [vmem:[%s604_s26] sm:$0xf] %vm285_vm0, %v309_v24  ;;  %v332_v27 = vadd.f32 %v331_v26, %v323_v23 }
  0xc2   : > { %v320_v28 = vpop.xlane.xlu0 %319 }
  0xc3   : > { %v321_v29 = vadd.f32 %v320_v28, %v312_v25  ;;  %333 = vst.msk [vmem:[%s280_s9] sm:$0xf] %vm285_vm0, %v332_v27 }
  0xc5   : > { %322 = vst.msk [vmem:[%s276_s6] sm:$0xf] %vm285_vm0, %v321_v29 }
  0xc6 PF: > { %s15_s17 = sadd.s32 1, %s549_s17   ;;  %s641_s15 = smov %s545_s16 }
  0xc7   : > { %p12_p5 = scmp.ge.s32.totalorder %s15_s17, 4   ;;  %s642_s16 = smov %s644_s18 }
  0xc9   :  { %14 = sbr.rel (!%p12_p5) target bundleno = 2 (0x2), region = 89 }

</bundles_post_ra>
